<compile_context>
chip_gen: v5e
topology: v5e:2x2
jax: 0.10.0
libtpu: 0.0.40
codegen_flags: <defaults>
</compile_context>

<pallas_src>
import math

import jax
import jax.numpy as jnp
from jax.experimental import pallas as pl
from jax.experimental.pallas import tpu as pltpu


# VMEM budget for the (double-buffered) input + output blocks of one grid step.
# Kept well under v7x's 64 MiB physical VMEM.
_VMEM_BLOCK_BUDGET = 20 << 20
_VMEM_LIMIT_BYTES = 48 << 20


def _to_list(x, length):
    if isinstance(x, (list, tuple)):
        assert len(x) == length, (x, length)
        return list(x)
    return [x] * length


def _front_end(side, size):
    """Replicates the per-dim pad computation of Pad.forward."""
    if side is None or size < 1:
        assert size == 0, size
        return 0, 0
    if side == 'front':
        return size, 0
    if side == 'both':
        return size // 2, math.ceil(size / 2)
    if side == 'end':
        return 0, size
    raise ValueError(f'pad side {side} unknown')


def _pick_bc_tile(BC, row_bytes, budget_bytes, sublane=1):
    """Pick a B*C tile size.

    row_bytes: bytes of (input + output) block per single bc row.
    Constraints: tile divides BC; for the 2-D (bc, T) block layout the tile is
    the second-to-last dim so it must be a multiple of the sublane packing (8
    for 4-byte, 16 for 2-byte, 32 for 1-byte dtypes) or equal to the full BC.
    Double-buffered blocks (2x) must fit the VMEM budget.
    """
    def ok(d):
        return (BC % d == 0
                and (d == BC or d % sublane == 0)
                and 2 * d * row_bytes <= budget_bytes)

    # Prefer a 2-way split of a fully-fitting problem so the grid has >= 2
    # parallel steps (keeps both TensorCores busy on v7x).
    if ok(BC) and BC % 2 == 0 and ok(BC // 2):
        return BC // 2
    for d in range(BC, 0, -1):
        if ok(d):
            return d
    # Fallback: nothing satisfies both constraints; full BC is always a legal
    # block shape (may need the raised vmem limit).
    return BC if sublane > 1 else 1


def _make_pad_kernel_2d(f_front, f_end, t_front, t_end, F, T, Fo, To):
    """Kernel for blocks of shape (bc_tile, F, T) -> (bc_tile, Fo, To)."""
    def kernel(x_ref, o_ref):
        bc = o_ref.shape[0]
        # Zero only the pad border strips (mode='constant', value=0).  The
        # F x T interior is written exactly once from x_ref below.
        if f_front > 0:
            o_ref[:, pl.ds(0, f_front), :] = jnp.zeros(
                (bc, f_front, To), o_ref.dtype)
        if f_end > 0:
            o_ref[:, pl.ds(f_front + F, f_end), :] = jnp.zeros(
                (bc, f_end, To), o_ref.dtype)
        if t_front > 0:
            o_ref[:, pl.ds(f_front, F), pl.ds(0, t_front)] = jnp.zeros(
                (bc, F, t_front), o_ref.dtype)
        if t_end > 0:
            o_ref[:, pl.ds(f_front, F), pl.ds(t_front + T, t_end)] = jnp.zeros(
                (bc, F, t_end), o_ref.dtype)
        o_ref[:, pl.ds(f_front, F), pl.ds(t_front, T)] = x_ref[...]
    return kernel


def _make_pad_kernel_1d(t_front, t_end, T, To):
    """Kernel for blocks of shape (bc_tile, T) -> (bc_tile, To)."""
    def kernel(x_ref, o_ref):
        bc = o_ref.shape[0]
        if t_front > 0:
            o_ref[:, pl.ds(0, t_front)] = jnp.zeros((bc, t_front), o_ref.dtype)
        if t_end > 0:
            o_ref[:, pl.ds(t_front + T, t_end)] = jnp.zeros(
                (bc, t_end), o_ref.dtype)
        o_ref[:, pl.ds(t_front, T)] = x_ref[...]
    return kernel


def pallas_pad(x, size, side='both', mode='constant'):
    """Pallas equivalent of Pad(side, mode)(x, size).

    x: (b, c, f, t) or (b, c, t)
    size: int or list of ints for the trailing (f,)t dims
    """
    if mode != 'constant':
        # TODO(synk): non-constant pad modes (reflect/replicate/circular) not implemented.
        raise NotImplementedError(f'mode={mode} not supported in Pallas kernel')

    ndim = x.ndim
    n_spatial = ndim - 2
    if n_spatial not in (1, 2):
        raise ValueError(f'unsupported ndim {ndim}')

    sides = _to_list(side, n_spatial)
    sizes = _to_list(size, n_spatial)
    pads = [_front_end(s, z) for s, z in zip(sides, sizes)]
    if all(p == (0, 0) for p in pads):
        return x

    B, C = x.shape[0], x.shape[1]
    BC = B * C
    itemsize = jnp.dtype(x.dtype).itemsize

    if n_spatial == 2:
        F, T = x.shape[2], x.shape[3]
        (f_front, f_end), (t_front, t_end) = pads
        Fo = F + f_front + f_end
        To = T + t_front + t_end

        x2 = x.reshape(BC, F, T)
        row_bytes = (F * T + Fo * To) * itemsize
        bc_tile = _pick_bc_tile(BC, row_bytes, _VMEM_BLOCK_BUDGET, sublane=1)
        grid = (BC // bc_tile,)

        out = pl.pallas_call(
            _make_pad_kernel_2d(f_front, f_end, t_front, t_end, F, T, Fo, To),
            out_shape=jax.ShapeDtypeStruct((BC, Fo, To), x.dtype),
            grid=grid,
            in_specs=[pl.BlockSpec((bc_tile, F, T), lambda i: (i, 0, 0))],
            out_specs=pl.BlockSpec((bc_tile, Fo, To), lambda i: (i, 0, 0)),
            compiler_params=pltpu.CompilerParams(
                dimension_semantics=("parallel",),
                vmem_limit_bytes=_VMEM_LIMIT_BYTES),
            cost_estimate=pl.CostEstimate(
                flops=0, transcendentals=0,
                bytes_accessed=BC * (F * T + Fo * To) * itemsize),
        )(x2)
        return out.reshape(B, C, Fo, To)

    else:  # n_spatial == 1: (b, c, t) — pack B*C onto the sublane dim.
        T = x.shape[2]
        (t_front, t_end), = pads
        To = T + t_front + t_end

        x2 = x.reshape(BC, T)
        # sublane packing: 8 rows for 4-byte, 16 for 2-byte, 32 for 1-byte dtypes
        sublane = max(1, 32 // itemsize)
        row_bytes = (T + To) * itemsize
        bc_tile = _pick_bc_tile(BC, row_bytes, _VMEM_BLOCK_BUDGET,
                                sublane=sublane)
        grid = (BC // bc_tile,)

        out = pl.pallas_call(
            _make_pad_kernel_1d(t_front, t_end, T, To),
            out_shape=jax.ShapeDtypeStruct((BC, To), x.dtype),
            grid=grid,
            in_specs=[pl.BlockSpec((bc_tile, T), lambda i: (i, 0))],
            out_specs=pl.BlockSpec((bc_tile, To), lambda i: (i, 0)),
            compiler_params=pltpu.CompilerParams(
                dimension_semantics=("parallel",),
                vmem_limit_bytes=_VMEM_LIMIT_BYTES),
            cost_estimate=pl.CostEstimate(
                flops=0, transcendentals=0,
                bytes_accessed=BC * (T + To) * itemsize),
        )(x2)
        return out.reshape(B, C, To)


if __name__ == "__main__":
    key = jax.random.PRNGKey(0)

    # 4-D case: b, c, f, t with side='both' (module default)
    x = jax.random.normal(key, (2, 4, 16, 16), dtype=jnp.float32)
    y = jax.block_until_ready(pallas_pad(x, (4, 6), side='both'))
    ref = jnp.pad(x, ((0, 0), (0, 0), (2, 2), (3, 3)))
    assert y.shape == (2, 4, 20, 22), y.shape
    assert jnp.allclose(y, ref), "mismatch vs 4D reference (side='both')"

    # 4-D case with mixed sides
    y2 = jax.block_until_ready(pallas_pad(x, (3, 5), side=('front', 'end')))
    ref2 = jnp.pad(x, ((0, 0), (0, 0), (3, 0), (0, 5)))
    assert y2.shape == (2, 4, 19, 21), y2.shape
    assert jnp.allclose(y2, ref2), "mismatch vs 4D reference (mixed sides)"

    # 3-D case: b, c, t with side='front'
    x3 = jax.random.normal(jax.random.PRNGKey(1), (2, 4, 16), dtype=jnp.float32)
    y3 = jax.block_until_ready(pallas_pad(x3, 5, side='front'))
    ref3 = jnp.pad(x3, ((0, 0), (0, 0), (5, 0)))
    assert y3.shape == (2, 4, 21), y3.shape
    assert jnp.allclose(y3, ref3), "mismatch vs 3D reference (side='front')"

    # 3-D case: side='end'
    y4 = jax.block_until_ready(pallas_pad(x3, 6, side='end'))
    ref4 = jnp.pad(x3, ((0, 0), (0, 0), (0, 6)))
    assert y4.shape == (2, 4, 22), y4.shape
    assert jnp.allclose(y4, ref4), "mismatch vs 3D reference (side='end')"

    print("KERNEL_OK")
</pallas_src>

<mosaic_0001>
module attributes {stable_mosaic.version = 11 : i64} {
  func.func @kernel(%arg0: i32, %arg1: memref<4x16x16xf32, #tpu.memory_space<vmem>>, %arg2: memref<4x20x22xf32, #tpu.memory_space<vmem>>) attributes {dimension_semantics = [#tpu.dimension_semantics<parallel>], iteration_bounds = array<i64: 2>, scalar_prefetch = 0 : i64, scratch_operands = 0 : i64, tpu.core_type = #tpu.core_type<tc>, window_params = [{transform_indices = @transform_0, window_bounds = array<i64: 4, 16, 16>}, {transform_indices = @transform_1, window_bounds = array<i64: 4, 20, 22>}]} {
    %cst = arith.constant 0.000000e+00 : f32
    %0 = vector.broadcast %cst : f32 to vector<4x2x22xf32>
    %c0 = arith.constant 0 : index
    %c0_0 = arith.constant 0 : index
    %c0_1 = arith.constant 0 : index
    %1 = vector.load %arg2[%c0, %c0_0, %c0_1] : memref<4x20x22xf32, #tpu.memory_space<vmem>>, vector<4x2x22xf32>
    tpu.vector_store %arg2[%c0, %c0_0, %c0_1], %0 {strides = array<i32>} : memref<4x20x22xf32, #tpu.memory_space<vmem>>, vector<4x2x22xf32>,
    %cst_2 = arith.constant 0.000000e+00 : f32
    %2 = vector.broadcast %cst_2 : f32 to vector<4x2x22xf32>
    %c0_3 = arith.constant 0 : index
    %c18 = arith.constant 18 : index
    %c0_4 = arith.constant 0 : index
    %3 = vector.load %arg2[%c0_3, %c18, %c0_4] : memref<4x20x22xf32, #tpu.memory_space<vmem>>, vector<4x2x22xf32>
    tpu.vector_store %arg2[%c0_3, %c18, %c0_4], %2 {strides = array<i32>} : memref<4x20x22xf32, #tpu.memory_space<vmem>>, vector<4x2x22xf32>,
    %cst_5 = arith.constant 0.000000e+00 : f32
    %4 = vector.broadcast %cst_5 : f32 to vector<4x16x3xf32>
    %c0_6 = arith.constant 0 : index
    %c2 = arith.constant 2 : index
    %c0_7 = arith.constant 0 : index
    %5 = vector.load %arg2[%c0_6, %c2, %c0_7] : memref<4x20x22xf32, #tpu.memory_space<vmem>>, vector<4x16x3xf32>
    tpu.vector_store %arg2[%c0_6, %c2, %c0_7], %4 {strides = array<i32>} : memref<4x20x22xf32, #tpu.memory_space<vmem>>, vector<4x16x3xf32>,
    %cst_8 = arith.constant 0.000000e+00 : f32
    %6 = vector.broadcast %cst_8 : f32 to vector<4x16x3xf32>
    %c0_9 = arith.constant 0 : index
    %c2_10 = arith.constant 2 : index
    %c19 = arith.constant 19 : index
    %7 = vector.load %arg2[%c0_9, %c2_10, %c19] : memref<4x20x22xf32, #tpu.memory_space<vmem>>, vector<4x16x3xf32>
    tpu.vector_store %arg2[%c0_9, %c2_10, %c19], %6 {strides = array<i32>} : memref<4x20x22xf32, #tpu.memory_space<vmem>>, vector<4x16x3xf32>,
    %c0_11 = arith.constant 0 : index
    %c0_12 = arith.constant 0 : index
    %c0_13 = arith.constant 0 : index
    %8 = vector.load %arg1[%c0_11, %c0_12, %c0_13] : memref<4x16x16xf32, #tpu.memory_space<vmem>>, vector<4x16x16xf32>
    %c0_14 = arith.constant 0 : index
    %c2_15 = arith.constant 2 : index
    %c3 = arith.constant 3 : index
    %9 = vector.load %arg2[%c0_14, %c2_15, %c3] : memref<4x20x22xf32, #tpu.memory_space<vmem>>, vector<4x16x16xf32>
    tpu.vector_store %arg2[%c0_14, %c2_15, %c3], %8 {strides = array<i32>} : memref<4x20x22xf32, #tpu.memory_space<vmem>>, vector<4x16x16xf32>,
    return
  }
  func.func @transform_0(%arg0: i32) -> (i32, i32, i32) {
    %c0_i32 = arith.constant 0 : i32
    %c0_i32_0 = arith.constant 0 : i32
    %c0_i32_1 = arith.constant 0 : i32
    return %arg0, %c0_i32, %c0_i32_0 : i32, i32, i32
  }
  func.func @transform_1(%arg0: i32) -> (i32, i32, i32) {
    %c0_i32 = arith.constant 0 : i32
    %c0_i32_0 = arith.constant 0 : i32
    %c0_i32_1 = arith.constant 0 : i32
    return %arg0, %c0_i32, %c0_i32_0 : i32, i32, i32
  }
}

</mosaic_0001>

<bundles_post_ra>
// kernel: tpu_custom_call.1
= control target key start
LH: loop header
LB: loop body
LE: loop exit
PB: predicated region body
PF: predicated region fallthrough
CT: control target
= control target key end

     0   :  { %6 = vsyncpa [#allocation3], 0  ;;  %s572_s0 = inlined_call_operand.hbm [shape: f32[8,16,16], index: 0, kind: input, shape index: {}]   ;;  %s573_s1 = inlined_call_operand.vmem [shape: f32[8,20,22], index: 1, kind: output, shape index: {}]  }
   0x1   :  { %8 = vsyncpa [#allocation3 + $0x1], 0  ;;  %s429_s6 = smov 0   ;;  %s431_s7 = smov 0  }
   0x2   :  { %s433_s8 = smov 0   ;;  %s435_s9 = smov 0  }
   0x3 LB: > { %s289_s10 = sadd.s32 4294967295, %s413_s9   ;;  %s449_s11 = sadd.s32 1, %s413_s9   ;;  %s413_s9 = sphi %s435_s9, %s580_s9   ;;  %s409_s8 = sphi %s433_s8, %s579_s8   ;;  %s405_s7 = sphi %s431_s7, %s578_s7   ;;  %s401_s6 = sphi %s429_s6, %s577_s6  }
   0x4   : > { %s18_s12 = ssub.s32 %s413_s9, %s449_s11  ;;  %s21_s13 = sadd.s32 1, %s409_s8 }
   0x5   : > { %p19_p0 = scmp.eq.s32.totalorder %s18_s12, 0  ;;  %p28_p1 = scmp.ne.s32.totalorder %s409_s8, %s405_s7 }
   0x6   : > { %p29_p2 = scmp.eq.s32.totalorder %s413_s9, 0  ;;  %p34_p3 = scmp.ne.s32.totalorder %s405_s7, %s401_s6 }
   0x7   : > { %s459_s14 = scalar_select %p19_p0, %s409_s8, %s21_s13  }
   0x8   : > { %p461_p4 = por %p29_p2, %p28_p1  ;;  %p35_p5 = scmp.eq.s32.totalorder %s289_s10, 0 }
   0x9   : > { %p312_p6 = scmp.lt.s32.totalorder %s413_s9, 2  ;;  %s84_s17 = sand.u32 1, %s409_s8  }
   0xa   : > { %p468_p7 = por %p35_p5, %p34_p3  ;;  %s293_s18 = sshll.u32 %s84_s17, 6 }
   0xb   : > { %s304_s19 = sshll.u32 %s413_s9, 6  ;;  %s88_s23 = scalar_lea.vmem [#allocation2], %s293_s18 }
   0xc   : > { %s94_s22 = scalar_lea.hbm %s572_s0, %s304_s19  ;;  %s97_s24 = sshll.u32 %s88_s23, 4  ;;  %s98_s24 = int_to_ptr.vmem [resolvable:$true] %s97_s24 }
   0xd   : > { %s95_s25 = sshll.u32 %s94_s22, 4  ;;  %p479_p8 = pnand %p312_p6, %p461_p4  ;;  %s96_s25 = int_to_ptr.hbm [resolvable:$true] %s95_s25 }
   0xe   : > { %p297_p9 = scmp.ge.s32.totalorder %s413_s9, 1  ;;  %s85_s27 = scalar_lea.sflag [#allocation3], %s84_s17 }
   0xf   : > { %s349_s28 = sshra.s32 %s96_s25, 4  ;;  %p353_p11 = pneg %p479_p8  ;;  %s350_s28 = int_to_ptr.hbm [resolvable:$true] %s349_s28 }
  0x10   : > { %s351_s29 = scalar_lea.hbm %s350_s28, 64  ;;  %s356_s3 = scalar_lea.hbm %s572_s0, 128 }
  0x11   : > { %p352_p10 = scmp.ne.s32.totalorder %s350_s28, %s351_s29  ;;  %p357_p0 = scmp.lt.s32.totalorder %s350_s28, %s572_s0 }
  0x12   : > { %p358_p1 = scmp.lt.s32.totalorder %s356_s3, %s351_s29 }
  0x13   : > { %p354_p12 = pnand %p353_p11, %p352_p10 }
  0x14   : > { %p359_p2 = por %p358_p1, %p357_p0 }
  0x15   : > { %p355_p13 = pneg %p354_p12 }
  0x17   : > { %p360_p3 = pnand %p359_p2, %p355_p13 }
  0x19   : > { %363 = shalt.err (!%p360_p3)
}
  0x1a   : > { %s415_s6 = smov 128   ;;  %s416_s12 = smov 8  }
  0x1b   : > { %311 = dma.hbm_to_vmem [thread:$0]  (!%p479_p8), %s96_s25, 1024, %s98_s24, %s85_s27, %s415_s6, %s415_s6, %s416_s12  }
  0x1c   : > { %p105_p4 = scmp.lt.s32.totalorder %s413_s9, 3 }
  0x1e   : > { %p106_p5 = pnand %p297_p9, %p105_p4 }
  0x1f   : > { %s111_s13 = sand.u32 (!%p106_p5), 1, %s405_s7  }
  0x20   : > { %109 = sbr.rel (%p106_p5) target bundleno = 173 (0xad), region = 24  ;;  %s298_s15 = sshll.u32 (!%p106_p5), %s111_s13, 6 }
  0x21   : > { %s112_s17 = scalar_lea.sflag (!%p106_p5), [#allocation3], %s111_s13  ;;  %s498_s18 = scalar_lea.vmem (!%p106_p5), [#allocation2], %s298_s15 }
  0x25   : > { %396 = dma.done.wait (%p468_p7), %s112_s17, 1024  }
  0x26   : > { %398 = vsyncadd (%p468_p7), %s112_s17, 4294966272  ;;  %s299_s19 = sshll.u32 %s289_s10, 2  ;;  %vm144_vm0 = vcmask 173056   ;;  %v173_v0 = vld [vmem:[%s498_s18 + $0x10] sm:$0xff]  ;;  %v171_v1 = vld [vmem:[%s498_s18] sm:$0xff]  ;;  %v417_v2 = vmov 0.0  }
  0x27   : > { %p138_p6 = scmp.lt.s32.totalorder %s299_s19, 7  ;;  %s418_s9 = smov 3   ;;  %v175_v3 = vld [vmem:[%s498_s18 + $0x20] sm:$0xff]  ;;  %v174_v4 = vld [vmem:[%s498_s18 + $0x18] sm:$0xff]  ;;  %v172_v5 = vld [vmem:[%s498_s18 + $0x8] sm:$0xff]  ;;  %vm153_vm1 = vcmask 23552  }
  0x28   : > { %191 = vrot.lane.b32.xlu1 %v173_v0, %s418_s9  ;;  %187 = vrot.lane.b32.xlu0 %v171_v1, %s418_s9  ;;  %v176_v6 = vld [vmem:[%s498_s18 + $0x28] sm:$0xff]  ;;  %v178_v7 = vld [vmem:[%s498_s18 + $0x38] sm:$0xff]  ;;  %vm162_vm2 = vcmask 179352   ;;  %vm211_vm3 = vcmask 154648  }
  0x29   : > { %s582_s19 = smov (!%p138_p6, %s299_s19), 7  ;;  %195 = vrot.lane.b32.xlu2 %v175_v3, %s418_s9  ;;  %v177_v8 = vld [vmem:[%s498_s18 + $0x30] sm:$0xff] }
  0x2a   : > { %s305_s20 = smul.u32 24, %s582_s19 }
  0x2c   : > { %s509_s23 = scalar_lea.vmem %s573_s1, %s305_s20 }
  0x2d   : > { %145 = vst.msk [vmem:[%s509_s23] sm:$0x3] %vm144_vm0, %v417_v2 }
  0x2e   : > { %146 = vst.msk [vmem:[%s509_s23 + $0x18] sm:$0x3] %vm144_vm0, %v417_v2 }
  0x2f   : > { %147 = vst.msk [vmem:[%s509_s23 + $0x30] sm:$0x3] %vm144_vm0, %v417_v2 }
  0x30   : > { %148 = vst.msk [vmem:[%s509_s23 + $0x48] sm:$0x3] %vm144_vm0, %v417_v2  ;;  %193 = vrot.lane.b32.xlu1 %v174_v4, %s418_s9  ;;  %189 = vrot.lane.b32.xlu0 %v172_v5, %s418_s9 }
  0x31   : > { %149 = vst.msk [vmem:[%s509_s23 + $0x12] sm:$0x3] %vm144_vm0, %v417_v2  ;;  %197 = vrot.lane.b32.xlu2 %v176_v6, %s418_s9 }
  0x32   : > { %150 = vst.msk [vmem:[%s509_s23 + $0x2a] sm:$0x3] %vm144_vm0, %v417_v2 }
  0x33   : > { %151 = vst.msk [vmem:[%s509_s23 + $0x42] sm:$0x3] %vm144_vm0, %v417_v2 }
  0x34   : > { %152 = vst.msk [vmem:[%s509_s23 + $0x5a] sm:$0x3] %vm144_vm0, %v417_v2 }
  0x35   : > { %154 = vst.msk [vmem:[%s509_s23 + $0x2] sm:$0xff] %vm153_vm1, %v417_v2 }
  0x36   : > { %156 = vst.msk [vmem:[%s509_s23 + $0x1a] sm:$0xff] %vm153_vm1, %v417_v2 }
  0x37   : > { %158 = vst.msk [vmem:[%s509_s23 + $0x32] sm:$0xff] %vm153_vm1, %v417_v2 }
  0x38   : > { %201 = vrot.lane.b32.xlu1 %v178_v7, %s418_s9  ;;  %199 = vrot.lane.b32.xlu0 %v177_v8, %s418_s9  ;;  %160 = vst.msk [vmem:[%s509_s23 + $0x4a] sm:$0xff] %vm153_vm1, %v417_v2 }
  0x39   : > { %163 = vst.msk [vmem:[%s509_s23 + $0x2] sm:$0xff] %vm162_vm2, %v417_v2 }
  0x3a   : > { %165 = vst.msk [vmem:[%s509_s23 + $0x1a] sm:$0xff] %vm162_vm2, %v417_v2 }
  0x3b   : > { %167 = vst.msk [vmem:[%s509_s23 + $0x32] sm:$0xff] %vm162_vm2, %v417_v2 }
  0x3c   : > { %169 = vst.msk [vmem:[%s509_s23 + $0x4a] sm:$0xff] %vm162_vm2, %v417_v2 }
  0x3d   : > { %155 = vst.msk [vmem:[%s509_s23 + $0xa] sm:$0xff] %vm153_vm1, %v417_v2 }
  0x3e   : > { %157 = vst.msk [vmem:[%s509_s23 + $0x22] sm:$0xff] %vm153_vm1, %v417_v2 }
  0x3f   : > { %159 = vst.msk [vmem:[%s509_s23 + $0x3a] sm:$0xff] %vm153_vm1, %v417_v2 }
  0x40   : > { %161 = vst.msk [vmem:[%s509_s23 + $0x52] sm:$0xff] %vm153_vm1, %v417_v2 }
  0x41   : > { %164 = vst.msk [vmem:[%s509_s23 + $0xa] sm:$0xff] %vm162_vm2, %v417_v2 }
  0x42   : > { %166 = vst.msk [vmem:[%s509_s23 + $0x22] sm:$0xff] %vm162_vm2, %v417_v2 }
  0x43   : > { %168 = vst.msk [vmem:[%s509_s23 + $0x3a] sm:$0xff] %vm162_vm2, %v417_v2 }
  0x44   : > { %170 = vst.msk [vmem:[%s509_s23 + $0x52] sm:$0xff] %vm162_vm2, %v417_v2 }
  0x83   : > { %v196_v9 = vpop.permute.xlu2 %195 }
  0x84   : > { %216 = vst.msk [vmem:[%s509_s23 + $0x32] sm:$0xff] %vm211_vm3, %v196_v9 }
  0x8b   : > { %v198_v12 = vpop.permute.xlu2 %197 }
  0x8c   : > { %217 = vst.msk [vmem:[%s509_s23 + $0x3a] sm:$0xff] %vm211_vm3, %v198_v12 }
  0x9a   : > { %v192_v10 = vpop.permute.xlu1 %191  ;;  %v188_v11 = vpop.permute.xlu0 %187 }
  0x9b   : > { %212 = vst.msk [vmem:[%s509_s23 + $0x2] sm:$0xff] %vm211_vm3, %v188_v11 }
  0x9c   : > { %214 = vst.msk [vmem:[%s509_s23 + $0x1a] sm:$0xff] %vm211_vm3, %v192_v10 }
  0xa2   : > { %v194_v13 = vpop.permute.xlu1 %193  ;;  %v190_v14 = vpop.permute.xlu0 %189 }
  0xa3   : > { %213 = vst.msk [vmem:[%s509_s23 + $0xa] sm:$0xff] %vm211_vm3, %v190_v14 }
  0xa4   : > { %215 = vst.msk [vmem:[%s509_s23 + $0x22] sm:$0xff] %vm211_vm3, %v194_v13 }
  0xaa   : > { %v202_v15 = vpop.permute.xlu1 %201  ;;  %v200_v16 = vpop.permute.xlu0 %199 }
  0xab   : > { %219 = vst.msk [vmem:[%s509_s23 + $0x52] sm:$0xff] %vm211_vm3, %v202_v15 }
  0xac   : > { %218 = vst.msk [vmem:[%s509_s23 + $0x4a] sm:$0xff] %vm211_vm3, %v200_v16 }
  0xad PF: > { %p11_p7 = scmp.ge.s32.totalorder %s449_s11, 4   ;;  %s577_s6 = smov %s405_s7 }
  0xae   : > { %s578_s7 = smov %s409_s8  ;;  %s579_s8 = smov %s459_s14 }
  0xaf   : > { %s580_s9 = smov %s449_s11  ;;  %13 = sbr.rel (!%p11_p7) target bundleno = 3 (0x3), region = 64 }
  0xb4   :  { %244 = vsyncpa [#allocation3], 1 }
  0xb5   :  { %246 = vsyncpa [#allocation3 + $0x1], 1 }

</bundles_post_ra>
